<compile_context>
chip_gen: v5e
topology: v5e:2x2
jax: 0.10.0
libtpu: 0.0.40
codegen_flags: <defaults>
</compile_context>

<pallas_src>
import numpy as np
import jax
import jax.numpy as jnp
from jax.experimental import pallas as pl
from jax.experimental.pallas import tpu as pltpu

_LANE = 128                       # lane width (last dim granularity)
_SUBLANE = 8                      # f32 sublane granularity (second-to-last dim)
_TARGET_BLOCK_BYTES = 4 << 20     # ~4 MiB blocks -> ~16 MiB pipelined VMEM
_SMALL_INPUT_BYTES = 256 * 1024   # below this, fused XLA beats pallas dispatch


def _round_up(a, b):
    return (a + b - 1) // b * b


def _consistent_dropout_kernel(x_ref, m_ref, o_ref):
    # x_ref: (TILE_B, TILE_F) batch slab; m_ref: (1, TILE_F) mask chunk shared
    # by every batch row (already scaled by 1/q and cast to x.dtype).
    o_ref[...] = x_ref[...] * m_ref[...]


def _make_mask(seed, q, f, dtype):
    """Bernoulli(q)/q mask row of shape (1, f); independent of tiling config."""
    key = jax.random.PRNGKey(seed)
    keep = jax.random.bernoulli(key, p=q, shape=(1, f))
    return (keep.astype(jnp.float32) * (1.0 / q)).astype(dtype)


def _pick_tiles(B, F, itemsize):
    """(8,128)-legal (TILE_B, TILE_F) targeting ~_TARGET_BLOCK_BYTES per block."""
    sub = _SUBLANE * max(1, 4 // itemsize)          # 8 (f32) / 16 (bf16) rows
    max_block_elems = max(1, _TARGET_BLOCK_BYTES // itemsize)

    # Lane (feature) tile: prefer the full row (contiguous DMA, full-extent dim
    # is exempt from the 128 rule) as long as a minimal `sub`-row block fits.
    if F * min(B, sub) <= max_block_elems:
        tile_f = F
    else:
        tile_f = max(_LANE,
                     (max_block_elems // min(B, sub)) // _LANE * _LANE)

    # Sublane (batch) tile from the remaining budget.
    rows = max(1, max_block_elems // tile_f)
    if rows >= B:
        tile_b = B                                   # full-extent batch dim
        if B >= 2 * sub:
            # Keep >= 2 batch blocks so both v7x TensorCores get work.
            tile_b = _round_up(pl.cdiv(B, 2), sub)
    else:
        tile_b = max(sub, (rows // sub) * sub)
    return tile_b, tile_f


def consistent_dropout(x, seed=0, p=0.5, *, min_pallas_bytes=_SMALL_INPUT_BYTES):
    """ConsistentDropout forward: x * (Bernoulli(1-p)/(1-p)), mask shared over batch."""
    q = 1.0 - p
    if q >= 1.0:                  # p <= 0: identity
        return x
    if q <= 0.0:
        # TODO(synk): torch's forward yields NaN here (0 * inf); we return zeros for p >= 1.
        return jnp.zeros_like(x)

    B = x.shape[0]
    F = int(np.prod(x.shape[1:]))
    mask = _make_mask(seed, q, F, x.dtype)           # (1, F), tiling-independent

    itemsize = jnp.dtype(x.dtype).itemsize
    if B * F * itemsize < min_pallas_bytes:
        # Tiny inputs: XLA's fused elementwise op is strictly faster than dispatch.
        return (x.reshape(B, F) * mask).reshape(x.shape)

    x2 = x.reshape(B, F)
    tile_b, tile_f = _pick_tiles(B, F, itemsize)
    # F outer / B inner: the (0, f) mask chunk is reused across the inner batch
    # tiles without re-DMA; both axes are independent -> parallel (megacore).
    grid = (pl.cdiv(F, tile_f), pl.cdiv(B, tile_b))

    out = pl.pallas_call(
        _consistent_dropout_kernel,
        out_shape=jax.ShapeDtypeStruct((B, F), x.dtype),
        grid=grid,
        in_specs=[
            pl.BlockSpec((tile_b, tile_f), lambda f, b: (b, f)),   # x slab
            pl.BlockSpec((1, tile_f), lambda f, b: (0, f)),        # mask chunk
        ],
        out_specs=pl.BlockSpec((tile_b, tile_f), lambda f, b: (b, f)),
        compiler_params=pltpu.CompilerParams(
            dimension_semantics=("parallel", "parallel"),
            vmem_limit_bytes=32 << 20),
    )(x2, mask)

    return out.reshape(x.shape)


if __name__ == "__main__":
    p = 0.5
    seed = 0
    q = 1.0 - p

    # Small NCHW input consistent with the module's usage; bypass the tiny-input
    # fast path so the Pallas kernel actually runs.
    x = jax.random.normal(jax.random.PRNGKey(0), (2, 4, 16, 16), dtype=jnp.float32)
    out = jax.block_until_ready(
        consistent_dropout(x, seed=seed, p=p, min_pallas_bytes=0))

    # Reference: the same (1, F) mask the wrapper draws, broadcast over batch.
    F = int(np.prod(x.shape[1:]))
    mask_row = np.asarray(_make_mask(seed, q, F, x.dtype))           # (1, F)
    mask_full = mask_row.reshape((1,) + x.shape[1:])
    expected = np.asarray(x) * mask_full

    out_np = np.asarray(out)
    assert out.shape == x.shape and out.dtype == x.dtype
    assert np.allclose(out_np, expected, rtol=1e-6, atol=1e-6)
    # Mask identical across the batch dimension; spot check both rows.
    kept = mask_full[0] != 0.0
    assert np.allclose(out_np[0][kept], np.asarray(x)[0][kept] / q, rtol=1e-6)
    assert np.allclose(out_np[1][kept], np.asarray(x)[1][kept] / q, rtol=1e-6)
    assert np.all(out_np[:, ~kept] == 0.0)

    # Second case: multi-block grid with a ragged last batch block
    # (B=18 -> batch tile 16, blocks of 16 and 2 rows).
    x2 = jax.random.normal(jax.random.PRNGKey(1), (18, 4, 16, 16), dtype=jnp.float32)
    out2 = jax.block_until_ready(
        consistent_dropout(x2, seed=seed, p=p, min_pallas_bytes=0))
    F2 = int(np.prod(x2.shape[1:]))
    mask2 = np.asarray(_make_mask(seed, q, F2, x2.dtype)).reshape((1,) + x2.shape[1:])
    assert np.allclose(np.asarray(out2), np.asarray(x2) * mask2, rtol=1e-6, atol=1e-6)

    print("KERNEL_OK")
</pallas_src>

<mosaic_0001>
module attributes {stable_mosaic.version = 11 : i64} {
  func.func @_consistent_dropout_kernel(%arg0: i32, %arg1: i32, %arg2: memref<2x1024xf32, #tpu.memory_space<vmem>>, %arg3: memref<1x1024xf32, #tpu.memory_space<vmem>>, %arg4: memref<2x1024xf32, #tpu.memory_space<vmem>>) attributes {dimension_semantics = [#tpu.dimension_semantics<parallel>, #tpu.dimension_semantics<parallel>], iteration_bounds = array<i64: 1, 1>, scalar_prefetch = 0 : i64, scratch_operands = 0 : i64, tpu.core_type = #tpu.core_type<tc>, window_params = [{transform_indices = @transform_0, window_bounds = array<i64: 2, 1024>}, {transform_indices = @transform_1, window_bounds = array<i64: 1, 1024>}, {transform_indices = @transform_2, window_bounds = array<i64: 2, 1024>}]} {
    %c0 = arith.constant 0 : index
    %c0_0 = arith.constant 0 : index
    %0 = vector.load %arg2[%c0, %c0_0] : memref<2x1024xf32, #tpu.memory_space<vmem>>, vector<2x1024xf32>
    %c0_1 = arith.constant 0 : index
    %c0_2 = arith.constant 0 : index
    %1 = vector.load %arg3[%c0_1, %c0_2] : memref<1x1024xf32, #tpu.memory_space<vmem>>, vector<1x1024xf32>
    %2 = vector.broadcast %1 : vector<1x1024xf32> to vector<2x1024xf32>
    %3 = arith.mulf %0, %2 : vector<2x1024xf32>
    %c0_3 = arith.constant 0 : index
    %c0_4 = arith.constant 0 : index
    %4 = vector.load %arg4[%c0_3, %c0_4] : memref<2x1024xf32, #tpu.memory_space<vmem>>, vector<2x1024xf32>
    tpu.vector_store %arg4[%c0_3, %c0_4], %3 {strides = array<i32>} : memref<2x1024xf32, #tpu.memory_space<vmem>>, vector<2x1024xf32>,
    return
  }
  func.func @transform_0(%arg0: i32, %arg1: i32) -> (i32, i32) {
    %c0_i32 = arith.constant 0 : i32
    return %arg1, %arg0 : i32, i32
  }
  func.func @transform_1(%arg0: i32, %arg1: i32) -> (i32, i32) {
    %c0_i32 = arith.constant 0 : i32
    %c0_i32_0 = arith.constant 0 : i32
    return %c0_i32, %arg0 : i32, i32
  }
  func.func @transform_2(%arg0: i32, %arg1: i32) -> (i32, i32) {
    %c0_i32 = arith.constant 0 : i32
    return %arg1, %arg0 : i32, i32
  }
}

</mosaic_0001>

<bundles_post_ra>
// kernel: tpu_custom_call.1
= control target key start
LH: loop header
LB: loop body
LE: loop exit
PB: predicated region body
PF: predicated region fallthrough
CT: control target
= control target key end

     0   :  { %7 = vsyncpa [#allocation3], 0  ;;  %s203_s0 = inlined_call_operand.hbm [shape: f32[2,1024], index: 0, kind: input, shape index: {}]   ;;  %s204_s1 = inlined_call_operand.hbm [shape: f32[1,1024], index: 1, kind: input, shape index: {}]   ;;  %s205_s2 = inlined_call_operand.hbm [shape: f32[2,1024], index: 2, kind: output, shape index: {}]  }
   0x1   :  { %8 = vsyncpa [#allocation6], 0 }
   0x2   :  { %9 = vsyncpa [#allocation4], 0  ;;  %s15_s11 = sshll.u32 %s203_s0, 4  ;;  %s172_s12 = smov [#allocation2]   ;;  %s16_s11 = int_to_ptr.hbm [resolvable:$true] %s15_s11 }
   0x3   :  { %s17_s13 = sshll.u32 %s172_s12, 4  ;;  %s26_s16 = sshll.u32 %s204_s1, 4  ;;  %s18_s13 = int_to_ptr.vmem [resolvable:$true] %s17_s13  ;;  %s27_s16 = int_to_ptr.hbm [resolvable:$true] %s26_s16 }
   0x4   :  { %20 = dma.hbm_to_vmem [thread:$0]  %s16_s11, 256, %s18_s13, [#allocation3]  }
   0x5   :  { %s173_s17 = smov [#allocation5]  }
   0x6   :  { %s28_s18 = sshll.u32 %s173_s17, 4  ;;  %s29_s18 = int_to_ptr.vmem [resolvable:$true] %s28_s18 }
   0x7   :  { %31 = dma.hbm_to_vmem [thread:$0]  %s27_s16, 128, %s29_s18, [#allocation6]  }
   0x8   :  { %166 = dma.done.wait [#allocation3], 256  }
   0x9   :  { %167 = vsyncadd [#allocation3], 4294967040 }
   0xa   :  { %168 = dma.done.wait [#allocation6], 128  }
   0xb   :  { %169 = vsyncadd [#allocation6], 4294967168  ;;  %v42_v0 = vld [vmem:[#allocation5] sm:$0xff]  ;;  %vm58_vm0 = vcmask 1041408   ;;  %vm60_vm1 = vcmask 1045508   ;;  %vm62_vm2 = vcmask 1043456  }
   0xc   :  { %v44_v1 = vperm.slane %v42_v0, 0  ;;  %v45_v2 = vperm.slane %v42_v0, 1  ;;  %v46_v3 = vperm.slane %v42_v0, 2  ;;  %v47_v4 = vperm.slane %v42_v0, 3  ;;  %v40_v12 = vld [vmem:[#allocation2] sm:$0xff]  ;;  %v41_v18 = vld [vmem:[#allocation2 + $0x8] sm:$0xff] }
   0xd   :  { %v48_v5 = vperm.slane %v42_v0, 4  ;;  %v49_v6 = vperm.slane %v42_v0, 5  ;;  %v50_v7 = vperm.slane %v42_v0, 6  ;;  %v51_v8 = vperm.slane %v42_v0, 7  ;;  %s174_s0 = smov [#allocation7]   ;;  %s80_s21 = sshll.u32 %s205_s2, 4  ;;  %s81_s21 = int_to_ptr.hbm [resolvable:$true] %s80_s21 }
   0xe   :  { %v52_v9 = vrot.slane %v45_v2, 6  ;;  %v53_v10 = vrot.slane %v46_v3, 4  ;;  %v54_v11 = vrot.slane %v47_v4, 2  ;;  %s78_s1 = sshll.u32 %s174_s0, 4  ;;  %s79_s1 = int_to_ptr.vmem [resolvable:$true] %s78_s1 }
   0xf   :  { %v55_v13 = vrot.slane %v49_v6, 6  ;;  %v56_v14 = vrot.slane %v50_v7, 4  ;;  %v57_v15 = vrot.slane %v51_v8, 2 }
  0x10   :  { %v59_v16 = vsel %vm58_vm0, %v44_v1, %v52_v9  ;;  %v61_v17 = vsel %vm60_vm1, %v53_v10, %v54_v11 }
  0x11   :  { %v63_v19 = vsel %vm62_vm2, %v59_v16, %v61_v17  ;;  %v64_v20 = vsel %vm58_vm0, %v48_v5, %v55_v13  ;;  %v65_v21 = vsel %vm60_vm1, %v56_v14, %v57_v15 }
  0x12   :  { %v69_v22 = vmul.f32 %v63_v19, %v40_v12  ;;  %v66_v23 = vsel %vm62_vm2, %v64_v20, %v65_v21 }
  0x13   :  { %v70_v24 = vmul.f32 %v66_v23, %v41_v18 }
  0x14   :  { %71 = vst [vmem:[#allocation7] sm:$0xff] %v69_v22 }
  0x15   :  { %72 = vst [vmem:[#allocation7 + $0x8] sm:$0xff] %v70_v24 }
  0x16   :  { %83 = dma.vmem_to_hbm [thread:$0]  %s79_s1, 256, %s81_s21, [#allocation4]  }
  0x17   :  { %170 = dma.done.wait [#allocation4], 256  }
  0x18   :  { %171 = vsyncadd [#allocation4], 4294967040 }
  0x19   :  { %88 = vsyncpa [#allocation3], 1 }
  0x1a   :  { %89 = vsyncpa [#allocation6], 1 }
  0x1b   :  { %90 = vsyncpa [#allocation4], 1 }

</bundles_post_ra>
